<compile_context>
chip_gen: v5e
topology: v5e:2x2
jax: 0.10.0
libtpu: 0.0.40
codegen_flags: <defaults>
</compile_context>

<pallas_src>
import functools

import jax
import jax.numpy as jnp
import numpy as np
from jax import lax
from jax.experimental import pallas as pl
from jax.experimental.pallas import tpu as pltpu


# --------------------------------------------------------------------------- #
# Fused LSTM kernel: per (batch-shard, time-chunk) grid step
# --------------------------------------------------------------------------- #
def _lstm_fused_kernel(x_ref, wih_ref, whh_ref, b_ref, out_ref, cn_ref,
                       xp_sc, h_sc, c_sc):
    t_idx = pl.program_id(1)  # time-chunk index (innermost, "arbitrary")

    @pl.when(t_idx == 0)
    def _init():
        h_sc[...] = jnp.zeros_like(h_sc)
        c_sc[...] = jnp.zeros_like(c_sc)

    tt_steps, bs, e = x_ref.shape
    h4 = wih_ref.shape[1]
    hdim = h4 // 4

    # Chunk-wide input projection: ONE big MXU matmul (bf16 x bf16 -> f32 acc),
    # result staged in VMEM scratch (no HBM round-trip).
    x2 = x_ref[...].reshape(tt_steps * bs, e)
    xp = jnp.dot(x2, wih_ref[...], preferred_element_type=jnp.float32) + b_ref[...]
    xp_sc[...] = xp.reshape(tt_steps, bs, h4)

    whh = whh_ref[...]  # (H, 4H), resident across the whole grid (constant index_map)

    def step(tt, carry):
        h, c = carry
        # Gates are pre-scaled (i/f/o columns of W and bias carry the 0.5 factor),
        # so one wide tanh covers all four gates.
        gates = xp_sc[tt] + jnp.dot(h.astype(whh.dtype), whh,
                                    preferred_element_type=jnp.float32)  # (Bs,4H) f32
        t_all = jnp.tanh(gates)
        i_g = 0.5 * t_all[:, 0 * hdim:1 * hdim] + 0.5
        f_g = 0.5 * t_all[:, 1 * hdim:2 * hdim] + 0.5
        g_g = t_all[:, 2 * hdim:3 * hdim]
        o_g = 0.5 * t_all[:, 3 * hdim:4 * hdim] + 0.5
        c = f_g * c + i_g * g_g
        h = o_g * jnp.tanh(c)
        out_ref[tt] = h.astype(out_ref.dtype)  # contiguous (Bs,H) time-major store
        return h, c

    h, c = lax.fori_loop(0, tt_steps, step, (h_sc[...], c_sc[...]), unroll=True)
    h_sc[...] = h
    c_sc[...] = c

    @pl.when(t_idx == pl.num_programs(1) - 1)
    def _final():
        cn_ref[0] = c  # final cell state for this batch shard


# --------------------------------------------------------------------------- #
# Wrapper
# --------------------------------------------------------------------------- #
def _vmem_limit_bytes():
    # ~40 MiB on v7x (64 MiB/TC), 96 MiB on v5e/v6e (128 MiB).
    try:
        cap = pltpu.get_tpu_info().vmem_capacity_bytes
    except Exception:
        cap = 64 * 1024 * 1024
    return max(16 * 1024 * 1024, min(cap - 24 * 1024 * 1024, 96 * 1024 * 1024))


def _pick_time_chunk(T, max_chunk=32):
    # Largest divisor of T <= max_chunk, preferring multiples of 8.
    best = None
    for c in range(min(T, max_chunk), 0, -1):
        if T % c == 0:
            if c % 8 == 0:
                return c
            if best is None:
                best = c
    return best if best is not None else T


def light_encoder_forward(src, params, *, time_chunk=None, batch_shards=1,
                          compute_dtype=jnp.bfloat16):
    """src: [B, T, E] (batch_first).  params: w_ih (4H,E), w_hh (4H,H), b_ih, b_hh.
    Returns (output[B,T,H], (h_n[1,B,H], c_n[1,B,H])) like nn.LSTM."""
    B, T, E = src.shape
    H4 = params["w_ih"].shape[0]
    H = H4 // 4

    if time_chunk is None:
        time_chunk = _pick_time_chunk(T)
    assert T % time_chunk == 0, "time_chunk must divide T"
    assert B % batch_shards == 0, "batch_shards must divide B"
    Bs = B // batch_shards
    # (8,128) rule on the (Bs, E)/(Bs, H) block tails: full batch or 8-row multiples.
    assert Bs == B or Bs % 8 == 0, "batch shard must be the full batch or a multiple of 8"
    nt = T // time_chunk

    # Fold the sigmoid pre-scale (0.5) into the i/f/o weight columns and bias, so the
    # kernel does a single wide tanh over all gates (sigmoid(x)=0.5*tanh(0.5x)+0.5).
    gate_scale = jnp.concatenate([
        jnp.full((H,), 0.5, jnp.float32),   # i
        jnp.full((H,), 0.5, jnp.float32),   # f
        jnp.full((H,), 1.0, jnp.float32),   # g (tanh)
        jnp.full((H,), 0.5, jnp.float32),   # o
    ]).reshape(1, H4)

    wih_t = (jnp.transpose(params["w_ih"]).astype(jnp.float32) * gate_scale
             ).astype(compute_dtype)                                   # (E, 4H)
    whh_t = (jnp.transpose(params["w_hh"]).astype(jnp.float32) * gate_scale
             ).astype(compute_dtype)                                   # (H, 4H)
    bias = ((params["b_ih"] + params["b_hh"]).astype(jnp.float32).reshape(1, H4)
            * gate_scale)                                              # (1, 4H) f32

    # Time-major layout + bf16 activations: halves the src HBM read and makes every
    # per-step kernel load/store a lane/sublane-dense 2-D tile.
    src_t = jnp.transpose(src, (1, 0, 2)).astype(compute_dtype)        # (T, B, E)

    out_t, c_n = pl.pallas_call(
        _lstm_fused_kernel,
        out_shape=(
            jax.ShapeDtypeStruct((T, B, H), src.dtype),
            jax.ShapeDtypeStruct((batch_shards, Bs, H), jnp.float32),
        ),
        grid_spec=pltpu.PrefetchScalarGridSpec(
            num_scalar_prefetch=0,
            grid=(batch_shards, nt),
            in_specs=[
                pl.BlockSpec((time_chunk, Bs, E), lambda b, t: (t, b, 0)),
                pl.BlockSpec((E, H4), lambda b, t: (0, 0)),  # W_ih^T resident
                pl.BlockSpec((H, H4), lambda b, t: (0, 0)),  # W_hh^T resident
                pl.BlockSpec((1, H4), lambda b, t: (0, 0)),  # bias resident
            ],
            out_specs=[
                pl.BlockSpec((time_chunk, Bs, H), lambda b, t: (t, b, 0)),
                pl.BlockSpec((1, Bs, H), lambda b, t: (b, 0, 0)),
            ],
            scratch_shapes=[
                pltpu.VMEM((time_chunk, Bs, H4), jnp.float32),  # staged input projection
                pltpu.VMEM((Bs, H), jnp.float32),               # h carry
                pltpu.VMEM((Bs, H), jnp.float32),               # c carry
            ],
        ),
        compiler_params=pltpu.CompilerParams(
            dimension_semantics=("parallel", "arbitrary"),
            vmem_limit_bytes=_vmem_limit_bytes()),
    )(src_t, wih_t, whh_t, bias)

    out = jnp.transpose(out_t, (1, 0, 2))            # back to batch-first (B, T, H)
    h_n = out_t[-1]                                  # (B, H): last timestep, no extra output
    c_n = c_n.reshape(B, H).astype(src.dtype)
    return out, (h_n[None, ...], c_n[None, ...])


# --------------------------------------------------------------------------- #
# Pure-JAX reference (lax.scan), matching the kernel's matmul compute dtype
# --------------------------------------------------------------------------- #
def _lstm_reference(src, params, compute_dtype=jnp.float32):
    B, T, E = src.shape
    H = params["w_hh"].shape[1]
    wih_t = jnp.transpose(params["w_ih"]).astype(compute_dtype)
    whh_t = jnp.transpose(params["w_hh"]).astype(compute_dtype)
    bias = (params["b_ih"] + params["b_hh"]).astype(jnp.float32)

    def step(carry, x_t):
        h, c = carry
        gates = (jnp.dot(x_t.astype(compute_dtype), wih_t,
                         preferred_element_type=jnp.float32)
                 + jnp.dot(h.astype(compute_dtype), whh_t,
                           preferred_element_type=jnp.float32)
                 + bias)
        i_g = jax.nn.sigmoid(gates[:, 0 * H:1 * H])
        f_g = jax.nn.sigmoid(gates[:, 1 * H:2 * H])
        g_g = jnp.tanh(gates[:, 2 * H:3 * H])
        o_g = jax.nn.sigmoid(gates[:, 3 * H:4 * H])
        c_new = f_g * c + i_g * g_g
        h_new = o_g * jnp.tanh(c_new)
        return (h_new, c_new), h_new

    h0 = jnp.zeros((B, H), jnp.float32)
    c0 = jnp.zeros((B, H), jnp.float32)
    (h_n, c_n), out_tbh = lax.scan(step, (h0, c0), jnp.transpose(src, (1, 0, 2)))
    return jnp.transpose(out_tbh, (1, 0, 2)), (h_n[None], c_n[None])


def init_params(key, embedding_dim, hidden_dim):
    k1, k2, k3, k4 = jax.random.split(key, 4)
    bound = 1.0 / np.sqrt(hidden_dim)
    u = lambda k, shape: jax.random.uniform(k, shape, jnp.float32, -bound, bound)
    return {
        "w_ih": u(k1, (4 * hidden_dim, embedding_dim)),
        "w_hh": u(k2, (4 * hidden_dim, hidden_dim)),
        "b_ih": u(k3, (4 * hidden_dim,)),
        "b_hh": u(k4, (4 * hidden_dim,)),
    }


if __name__ == "__main__":
    B, T, E, H = 2, 16, 32, 32
    key = jax.random.PRNGKey(0)
    k_src, k_par = jax.random.split(key)
    src = jax.random.normal(k_src, (B, T, E), jnp.float32)
    params = init_params(k_par, E, H)

    # time_chunk=8 -> two time chunks, exercising the carried h/c across grid steps.
    fwd = jax.jit(functools.partial(
        light_encoder_forward, time_chunk=8, batch_shards=1,
        compute_dtype=jnp.bfloat16))
    out, (h_n, c_n) = fwd(src, params)
    jax.block_until_ready((out, h_n, c_n))

    ref_out, (ref_h, ref_c) = _lstm_reference(src, params, compute_dtype=jnp.bfloat16)
    np.testing.assert_allclose(np.asarray(out), np.asarray(ref_out), atol=2e-3, rtol=2e-3)
    np.testing.assert_allclose(np.asarray(h_n), np.asarray(ref_h), atol=2e-3, rtol=2e-3)
    np.testing.assert_allclose(np.asarray(c_n), np.asarray(ref_c), atol=2e-3, rtol=2e-3)

    print("KERNEL_OK")
</pallas_src>

<mosaic_0001>
module attributes {stable_mosaic.version = 11 : i64} {
  func.func @_lstm_fused_kernel(%arg0: i32, %arg1: i32, %arg2: memref<8x2x32xbf16, #tpu.memory_space<vmem>>, %arg3: memref<32x128xbf16, #tpu.memory_space<vmem>>, %arg4: memref<32x128xbf16, #tpu.memory_space<vmem>>, %arg5: memref<1x128xf32, #tpu.memory_space<vmem>>, %arg6: memref<8x2x32xf32, #tpu.memory_space<vmem>>, %arg7: memref<1x2x32xf32, #tpu.memory_space<vmem>>, %arg8: memref<8x2x128xf32, #tpu.memory_space<vmem>>, %arg9: memref<2x32xf32, #tpu.memory_space<vmem>>, %arg10: memref<2x32xf32, #tpu.memory_space<vmem>>) attributes {dimension_semantics = [#tpu.dimension_semantics<parallel>, #tpu.dimension_semantics<arbitrary>], iteration_bounds = array<i64: 1, 2>, scalar_prefetch = 0 : i64, scratch_operands = 3 : i64, tpu.core_type = #tpu.core_type<tc>, window_params = [{transform_indices = @transform_0, window_bounds = array<i64: 8, 2, 32>}, {pipeline_mode = #tpu.pipeline_mode<synchronous>, transform_indices = @transform_1, window_bounds = array<i64: 32, 128>}, {pipeline_mode = #tpu.pipeline_mode<synchronous>, transform_indices = @transform_2, window_bounds = array<i64: 32, 128>}, {pipeline_mode = #tpu.pipeline_mode<synchronous>, transform_indices = @transform_3, window_bounds = array<i64: 1, 128>}, {transform_indices = @transform_4, window_bounds = array<i64: 8, 2, 32>}, {transform_indices = @transform_5, window_bounds = array<i64: 1, 2, 32>}]} {
    %c0_i32 = arith.constant 0 : i32
    %0 = arith.cmpi eq, %arg1, %c0_i32 : i32
    %1 = arith.extui %0 : i1 to i32
    %c0_i32_0 = arith.constant 0 : i32
    %2 = arith.cmpi ne, %1, %c0_i32_0 : i32
    scf.if %2 {
      %cst_111 = arith.constant 0.000000e+00 : f32
      %276 = vector.broadcast %cst_111 : f32 to vector<2x32xf32>
      %c0_112 = arith.constant 0 : index
      %c0_113 = arith.constant 0 : index
      %277 = vector.load %arg9[%c0_112, %c0_113] : memref<2x32xf32, #tpu.memory_space<vmem>>, vector<2x32xf32>
      tpu.vector_store %arg9[%c0_112, %c0_113], %276 {strides = array<i32>} : memref<2x32xf32, #tpu.memory_space<vmem>>, vector<2x32xf32>,
      %cst_114 = arith.constant 0.000000e+00 : f32
      %278 = vector.broadcast %cst_114 : f32 to vector<2x32xf32>
      %c0_115 = arith.constant 0 : index
      %c0_116 = arith.constant 0 : index
      %279 = vector.load %arg10[%c0_115, %c0_116] : memref<2x32xf32, #tpu.memory_space<vmem>>, vector<2x32xf32>
      tpu.vector_store %arg10[%c0_115, %c0_116], %278 {strides = array<i32>} : memref<2x32xf32, #tpu.memory_space<vmem>>, vector<2x32xf32>,
    } else {
    }
    %c0 = arith.constant 0 : index
    %c0_1 = arith.constant 0 : index
    %c0_2 = arith.constant 0 : index
    %3 = vector.load %arg2[%c0, %c0_1, %c0_2] : memref<8x2x32xbf16, #tpu.memory_space<vmem>>, vector<8x2x32xbf16>
    %4 = vector.shape_cast %3 : vector<8x2x32xbf16> to vector<16x32xbf16>
    %c0_3 = arith.constant 0 : index
    %c0_4 = arith.constant 0 : index
    %5 = vector.load %arg3[%c0_3, %c0_4] : memref<32x128xbf16, #tpu.memory_space<vmem>>, vector<32x128xbf16>
    %cst = arith.constant dense<0.000000e+00> : vector<16x128xf32>
    %6 = tpu.matmul %4, %5, %cst {dimension_numbers = #tpu.dot_dimension_numbers<[1], [0], [0], [1], [0, 0, 1, 1], [], []>} : vector<16x32xbf16>, vector<32x128xbf16>, vector<16x128xf32> -> vector<16x128xf32>
    %c0_5 = arith.constant 0 : index
    %c0_6 = arith.constant 0 : index
    %7 = vector.load %arg5[%c0_5, %c0_6] : memref<1x128xf32, #tpu.memory_space<vmem>>, vector<1x128xf32>
    %8 = vector.broadcast %7 : vector<1x128xf32> to vector<16x128xf32>
    %9 = arith.addf %6, %8 : vector<16x128xf32>
    %10 = vector.shape_cast %9 : vector<16x128xf32> to vector<8x2x128xf32>
    %c0_7 = arith.constant 0 : index
    %c0_8 = arith.constant 0 : index
    %c0_9 = arith.constant 0 : index
    %11 = vector.load %arg8[%c0_7, %c0_8, %c0_9] : memref<8x2x128xf32, #tpu.memory_space<vmem>>, vector<8x2x128xf32>
    tpu.vector_store %arg8[%c0_7, %c0_8, %c0_9], %10 {strides = array<i32>} : memref<8x2x128xf32, #tpu.memory_space<vmem>>, vector<8x2x128xf32>,
    %c0_10 = arith.constant 0 : index
    %c0_11 = arith.constant 0 : index
    %12 = vector.load %arg4[%c0_10, %c0_11] : memref<32x128xbf16, #tpu.memory_space<vmem>>, vector<32x128xbf16>
    %c0_12 = arith.constant 0 : index
    %c0_13 = arith.constant 0 : index
    %13 = vector.load %arg9[%c0_12, %c0_13] : memref<2x32xf32, #tpu.memory_space<vmem>>, vector<2x32xf32>
    %c0_14 = arith.constant 0 : index
    %c0_15 = arith.constant 0 : index
    %14 = vector.load %arg10[%c0_14, %c0_15] : memref<2x32xf32, #tpu.memory_space<vmem>>, vector<2x32xf32>
    %c0_i32_16 = arith.constant 0 : i32
    %15 = arith.index_cast %c0_i32_16 : i32 to index
    %c0_17 = arith.constant 0 : index
    %c0_18 = arith.constant 0 : index
    %16 = vector.load %arg8[%15, %c0_17, %c0_18] : memref<8x2x128xf32, #tpu.memory_space<vmem>>, vector<1x2x128xf32>
    %17 = vector.shape_cast %16 : vector<1x2x128xf32> to vector<2x128xf32>
    %18 = arith.truncf %13 : vector<2x32xf32> to vector<2x32xbf16>
    %cst_19 = arith.constant dense<0.000000e+00> : vector<2x128xf32>
    %19 = tpu.matmul %18, %12, %cst_19 {dimension_numbers = #tpu.dot_dimension_numbers<[1], [0], [0], [1], [0, 0, 1, 1], [], []>} : vector<2x32xbf16>, vector<32x128xbf16>, vector<2x128xf32> -> vector<2x128xf32>
    %20 = arith.addf %17, %19 : vector<2x128xf32>
    %21 = math.tanh %20 : vector<2x128xf32>
    %22 = vector.extract_strided_slice %21 {offsets = [0, 0], sizes = [2, 32], strides = [1, 1]} : vector<2x128xf32> to vector<2x32xf32>
    %cst_20 = arith.constant 5.000000e-01 : f32
    %23 = vector.broadcast %cst_20 : f32 to vector<2x32xf32>
    %24 = arith.mulf %23, %22 : vector<2x32xf32>
    %cst_21 = arith.constant 5.000000e-01 : f32
    %25 = vector.broadcast %cst_21 : f32 to vector<2x32xf32>
    %26 = arith.addf %24, %25 : vector<2x32xf32>
    %27 = vector.extract_strided_slice %21 {offsets = [0, 32], sizes = [2, 32], strides = [1, 1]} : vector<2x128xf32> to vector<2x32xf32>
    %cst_22 = arith.constant 5.000000e-01 : f32
    %28 = vector.broadcast %cst_22 : f32 to vector<2x32xf32>
    %29 = arith.mulf %28, %27 : vector<2x32xf32>
    %cst_23 = arith.constant 5.000000e-01 : f32
    %30 = vector.broadcast %cst_23 : f32 to vector<2x32xf32>
    %31 = arith.addf %29, %30 : vector<2x32xf32>
    %32 = vector.extract_strided_slice %21 {offsets = [0, 64], sizes = [2, 32], strides = [1, 1]} : vector<2x128xf32> to vector<2x32xf32>
    %33 = vector.extract_strided_slice %21 {offsets = [0, 96], sizes = [2, 32], strides = [1, 1]} : vector<2x128xf32> to vector<2x32xf32>
    %cst_24 = arith.constant 5.000000e-01 : f32
    %34 = vector.broadcast %cst_24 : f32 to vector<2x32xf32>
    %35 = arith.mulf %34, %33 : vector<2x32xf32>
    %cst_25 = arith.constant 5.000000e-01 : f32
    %36 = vector.broadcast %cst_25 : f32 to vector<2x32xf32>
    %37 = arith.addf %35, %36 : vector<2x32xf32>
    %38 = arith.mulf %31, %14 : vector<2x32xf32>
    %39 = arith.mulf %26, %32 : vector<2x32xf32>
    %40 = arith.addf %38, %39 : vector<2x32xf32>
    %41 = math.tanh %40 : vector<2x32xf32>
    %42 = arith.mulf %37, %41 : vector<2x32xf32>
    %43 = arith.index_cast %c0_i32_16 : i32 to index
    %c0_26 = arith.constant 0 : index
    %c0_27 = arith.constant 0 : index
    %44 = vector.load %arg6[%43, %c0_26, %c0_27] : memref<8x2x32xf32, #tpu.memory_space<vmem>>, vector<1x2x32xf32>
    %45 = vector.shape_cast %44 : vector<1x2x32xf32> to vector<2x32xf32>
    %46 = vector.shape_cast %42 : vector<2x32xf32> to vector<1x2x32xf32>
    tpu.vector_store %arg6[%43, %c0_26, %c0_27], %46 {strides = array<i32>} : memref<8x2x32xf32, #tpu.memory_space<vmem>>, vector<1x2x32xf32>,
    %c1_i32 = arith.constant 1 : i32
    %47 = arith.index_cast %c1_i32 : i32 to index
    %c0_28 = arith.constant 0 : index
    %c0_29 = arith.constant 0 : index
    %48 = vector.load %arg8[%47, %c0_28, %c0_29] : memref<8x2x128xf32, #tpu.memory_space<vmem>>, vector<1x2x128xf32>
    %49 = vector.shape_cast %48 : vector<1x2x128xf32> to vector<2x128xf32>
    %50 = arith.truncf %42 : vector<2x32xf32> to vector<2x32xbf16>
    %cst_30 = arith.constant dense<0.000000e+00> : vector<2x128xf32>
    %51 = tpu.matmul %50, %12, %cst_30 {dimension_numbers = #tpu.dot_dimension_numbers<[1], [0], [0], [1], [0, 0, 1, 1], [], []>} : vector<2x32xbf16>, vector<32x128xbf16>, vector<2x128xf32> -> vector<2x128xf32>
    %52 = arith.addf %49, %51 : vector<2x128xf32>
    %53 = math.tanh %52 : vector<2x128xf32>
    %54 = vector.extract_strided_slice %53 {offsets = [0, 0], sizes = [2, 32], strides = [1, 1]} : vector<2x128xf32> to vector<2x32xf32>
    %cst_31 = arith.constant 5.000000e-01 : f32
    %55 = vector.broadcast %cst_31 : f32 to vector<2x32xf32>
    %56 = arith.mulf %55, %54 : vector<2x32xf32>
    %cst_32 = arith.constant 5.000000e-01 : f32
    %57 = vector.broadcast %cst_32 : f32 to vector<2x32xf32>
    %58 = arith.addf %56, %57 : vector<2x32xf32>
    %59 = vector.extract_strided_slice %53 {offsets = [0, 32], sizes = [2, 32], strides = [1, 1]} : vector<2x128xf32> to vector<2x32xf32>
    %cst_33 = arith.constant 5.000000e-01 : f32
    %60 = vector.broadcast %cst_33 : f32 to vector<2x32xf32>
    %61 = arith.mulf %60, %59 : vector<2x32xf32>
    %cst_34 = arith.constant 5.000000e-01 : f32
    %62 = vector.broadcast %cst_34 : f32 to vector<2x32xf32>
    %63 = arith.addf %61, %62 : vector<2x32xf32>
    %64 = vector.extract_strided_slice %53 {offsets = [0, 64], sizes = [2, 32], strides = [1, 1]} : vector<2x128xf32> to vector<2x32xf32>
    %65 = vector.extract_strided_slice %53 {offsets = [0, 96], sizes = [2, 32], strides = [1, 1]} : vector<2x128xf32> to vector<2x32xf32>
    %cst_35 = arith.constant 5.000000e-01 : f32
    %66 = vector.broadcast %cst_35 : f32 to vector<2x32xf32>
    %67 = arith.mulf %66, %65 : vector<2x32xf32>
    %cst_36 = arith.constant 5.000000e-01 : f32
    %68 = vector.broadcast %cst_36 : f32 to vector<2x32xf32>
    %69 = arith.addf %67, %68 : vector<2x32xf32>
    %70 = arith.mulf %63, %40 : vector<2x32xf32>
    %71 = arith.mulf %58, %64 : vector<2x32xf32>
    %72 = arith.addf %70, %71 : vector<2x32xf32>
    %73 = math.tanh %72 : vector<2x32xf32>
    %74 = arith.mulf %69, %73 : vector<2x32xf32>
    %75 = arith.index_cast %c1_i32 : i32 to index
    %c0_37 = arith.constant 0 : index
    %c0_38 = arith.constant 0 : index
    %76 = vector.load %arg6[%75, %c0_37, %c0_38] : memref<8x2x32xf32, #tpu.memory_space<vmem>>, vector<1x2x32xf32>
    %77 = vector.shape_cast %76 : vector<1x2x32xf32> to vector<2x32xf32>
    %78 = vector.shape_cast %74 : vector<2x32xf32> to vector<1x2x32xf32>
    tpu.vector_store %arg6[%75, %c0_37, %c0_38], %78 {strides = array<i32>} : memref<8x2x32xf32, #tpu.memory_space<vmem>>, vector<1x2x32xf32>,
    %c2_i32 = arith.constant 2 : i32
    %79 = arith.index_cast %c2_i32 : i32 to index
    %c0_39 = arith.constant 0 : index
    %c0_40 = arith.constant 0 : index
    %80 = vector.load %arg8[%79, %c0_39, %c0_40] : memref<8x2x128xf32, #tpu.memory_space<vmem>>, vector<1x2x128xf32>
    %81 = vector.shape_cast %80 : vector<1x2x128xf32> to vector<2x128xf32>
    %82 = arith.truncf %74 : vector<2x32xf32> to vector<2x32xbf16>
    %cst_41 = arith.constant dense<0.000000e+00> : vector<2x128xf32>
    %83 = tpu.matmul %82, %12, %cst_41 {dimension_numbers = #tpu.dot_dimension_numbers<[1], [0], [0], [1], [0, 0, 1, 1], [], []>} : vector<2x32xbf16>, vector<32x128xbf16>, vector<2x128xf32> -> vector<2x128xf32>
    %84 = arith.addf %81, %83 : vector<2x128xf32>
    %85 = math.tanh %84 : vector<2x128xf32>
    %86 = vector.extract_strided_slice %85 {offsets = [0, 0], sizes = [2, 32], strides = [1, 1]} : vector<2x128xf32> to vector<2x32xf32>
    %cst_42 = arith.constant 5.000000e-01 : f32
    %87 = vector.broadcast %cst_42 : f32 to vector<2x32xf32>
    %88 = arith.mulf %87, %86 : vector<2x32xf32>
    %cst_43 = arith.constant 5.000000e-01 : f32
    %89 = vector.broadcast %cst_43 : f32 to vector<2x32xf32>
    %90 = arith.addf %88, %89 : vector<2x32xf32>
    %91 = vector.extract_strided_slice %85 {offsets = [0, 32], sizes = [2, 32], strides = [1, 1]} : vector<2x128xf32> to vector<2x32xf32>
    %cst_44 = arith.constant 5.000000e-01 : f32
    %92 = vector.broadcast %cst_44 : f32 to vector<2x32xf32>
    %93 = arith.mulf %92, %91 : vector<2x32xf32>
    %cst_45 = arith.constant 5.000000e-01 : f32
    %94 = vector.broadcast %cst_45 : f32 to vector<2x32xf32>
    %95 = arith.addf %93, %94 : vector<2x32xf32>
    %96 = vector.extract_strided_slice %85 {offsets = [0, 64], sizes = [2, 32], strides = [1, 1]} : vector<2x128xf32> to vector<2x32xf32>
    %97 = vector.extract_strided_slice %85 {offsets = [0, 96], sizes = [2, 32], strides = [1, 1]} : vector<2x128xf32> to vector<2x32xf32>
    %cst_46 = arith.constant 5.000000e-01 : f32
    %98 = vector.broadcast %cst_46 : f32 to vector<2x32xf32>
    %99 = arith.mulf %98, %97 : vector<2x32xf32>
    %cst_47 = arith.constant 5.000000e-01 : f32
    %100 = vector.broadcast %cst_47 : f32 to vector<2x32xf32>
    %101 = arith.addf %99, %100 : vector<2x32xf32>
    %102 = arith.mulf %95, %72 : vector<2x32xf32>
    %103 = arith.mulf %90, %96 : vector<2x32xf32>
    %104 = arith.addf %102, %103 : vector<2x32xf32>
    %105 = math.tanh %104 : vector<2x32xf32>
    %106 = arith.mulf %101, %105 : vector<2x32xf32>
    %107 = arith.index_cast %c2_i32 : i32 to index
    %c0_48 = arith.constant 0 : index
    %c0_49 = arith.constant 0 : index
    %108 = vector.load %arg6[%107, %c0_48, %c0_49] : memref<8x2x32xf32, #tpu.memory_space<vmem>>, vector<1x2x32xf32>
    %109 = vector.shape_cast %108 : vector<1x2x32xf32> to vector<2x32xf32>
    %110 = vector.shape_cast %106 : vector<2x32xf32> to vector<1x2x32xf32>
    tpu.vector_store %arg6[%107, %c0_48, %c0_49], %110 {strides = array<i32>} : memref<8x2x32xf32, #tpu.memory_space<vmem>>, vector<1x2x32xf32>,
    %c3_i32 = arith.constant 3 : i32
    %111 = arith.index_cast %c3_i32 : i32 to index
    %c0_50 = arith.constant 0 : index
    %c0_51 = arith.constant 0 : index
    %112 = vector.load %arg8[%111, %c0_50, %c0_51] : memref<8x2x128xf32, #tpu.memory_space<vmem>>, vector<1x2x128xf32>
    %113 = vector.shape_cast %112 : vector<1x2x128xf32> to vector<2x128xf32>
    %114 = arith.truncf %106 : vector<2x32xf32> to vector<2x32xbf16>
    %cst_52 = arith.constant dense<0.000000e+00> : vector<2x128xf32>
    %115 = tpu.matmul %114, %12, %cst_52 {dimension_numbers = #tpu.dot_dimension_numbers<[1], [0], [0], [1], [0, 0, 1, 1], [], []>} : vector<2x32xbf16>, vector<32x128xbf16>, vector<2x128xf32> -> vector<2x128xf32>
    %116 = arith.addf %113, %115 : vector<2x128xf32>
    %117 = math.tanh %116 : vector<2x128xf32>
    %118 = vector.extract_strided_slice %117 {offsets = [0, 0], sizes = [2, 32], strides = [1, 1]} : vector<2x128xf32> to vector<2x32xf32>
    %cst_53 = arith.constant 5.000000e-01 : f32
    %119 = vector.broadcast %cst_53 : f32 to vector<2x32xf32>
    %120 = arith.mulf %119, %118 : vector<2x32xf32>
    %cst_54 = arith.constant 5.000000e-01 : f32
    %121 = vector.broadcast %cst_54 : f32 to vector<2x32xf32>
    %122 = arith.addf %120, %121 : vector<2x32xf32>
    %123 = vector.extract_strided_slice %117 {offsets = [0, 32], sizes = [2, 32], strides = [1, 1]} : vector<2x128xf32> to vector<2x32xf32>
    %cst_55 = arith.constant 5.000000e-01 : f32
    %124 = vector.broadcast %cst_55 : f32 to vector<2x32xf32>
    %125 = arith.mulf %124, %123 : vector<2x32xf32>
    %cst_56 = arith.constant 5.000000e-01 : f32
    %126 = vector.broadcast %cst_56 : f32 to vector<2x32xf32>
    %127 = arith.addf %125, %126 : vector<2x32xf32>
    %128 = vector.extract_strided_slice %117 {offsets = [0, 64], sizes = [2, 32], strides = [1, 1]} : vector<2x128xf32> to vector<2x32xf32>
    %129 = vector.extract_strided_slice %117 {offsets = [0, 96], sizes = [2, 32], strides = [1, 1]} : vector<2x128xf32> to vector<2x32xf32>
    %cst_57 = arith.constant 5.000000e-01 : f32
    %130 = vector.broadcast %cst_57 : f32 to vector<2x32xf32>
    %131 = arith.mulf %130, %129 : vector<2x32xf32>
    %cst_58 = arith.constant 5.000000e-01 : f32
    %132 = vector.broadcast %cst_58 : f32 to vector<2x32xf32>
    %133 = arith.addf %131, %132 : vector<2x32xf32>
    %134 = arith.mulf %127, %104 : vector<2x32xf32>
    %135 = arith.mulf %122, %128 : vector<2x32xf32>
    %136 = arith.addf %134, %135 : vector<2x32xf32>
    %137 = math.tanh %136 : vector<2x32xf32>
    %138 = arith.mulf %133, %137 : vector<2x32xf32>
    %139 = arith.index_cast %c3_i32 : i32 to index
    %c0_59 = arith.constant 0 : index
    %c0_60 = arith.constant 0 : index
    %140 = vector.load %arg6[%139, %c0_59, %c0_60] : memref<8x2x32xf32, #tpu.memory_space<vmem>>, vector<1x2x32xf32>
    %141 = vector.shape_cast %140 : vector<1x2x32xf32> to vector<2x32xf32>
    %142 = vector.shape_cast %138 : vector<2x32xf32> to vector<1x2x32xf32>
    tpu.vector_store %arg6[%139, %c0_59, %c0_60], %142 {strides = array<i32>} : memref<8x2x32xf32, #tpu.memory_space<vmem>>, vector<1x2x32xf32>,
    %c4_i32 = arith.constant 4 : i32
    %143 = arith.index_cast %c4_i32 : i32 to index
    %c0_61 = arith.constant 0 : index
    %c0_62 = arith.constant 0 : index
    %144 = vector.load %arg8[%143, %c0_61, %c0_62] : memref<8x2x128xf32, #tpu.memory_space<vmem>>, vector<1x2x128xf32>
    %145 = vector.shape_cast %144 : vector<1x2x128xf32> to vector<2x128xf32>
    %146 = arith.truncf %138 : vector<2x32xf32> to vector<2x32xbf16>
    %cst_63 = arith.constant dense<0.000000e+00> : vector<2x128xf32>
    %147 = tpu.matmul %146, %12, %cst_63 {dimension_numbers = #tpu.dot_dimension_numbers<[1], [0], [0], [1], [0, 0, 1, 1], [], []>} : vector<2x32xbf16>, vector<32x128xbf16>, vector<2x128xf32> -> vector<2x128xf32>
    %148 = arith.addf %145, %147 : vector<2x128xf32>
    %149 = math.tanh %148 : vector<2x128xf32>
    %150 = vector.extract_strided_slice %149 {offsets = [0, 0], sizes = [2, 32], strides = [1, 1]} : vector<2x128xf32> to vector<2x32xf32>
    %cst_64 = arith.constant 5.000000e-01 : f32
    %151 = vector.broadcast %cst_64 : f32 to vector<2x32xf32>
    %152 = arith.mulf %151, %150 : vector<2x32xf32>
    %cst_65 = arith.constant 5.000000e-01 : f32
    %153 = vector.broadcast %cst_65 : f32 to vector<2x32xf32>
    %154 = arith.addf %152, %153 : vector<2x32xf32>
    %155 = vector.extract_strided_slice %149 {offsets = [0, 32], sizes = [2, 32], strides = [1, 1]} : vector<2x128xf32> to vector<2x32xf32>
    %cst_66 = arith.constant 5.000000e-01 : f32
    %156 = vector.broadcast %cst_66 : f32 to vector<2x32xf32>
    %157 = arith.mulf %156, %155 : vector<2x32xf32>
    %cst_67 = arith.constant 5.000000e-01 : f32
    %158 = vector.broadcast %cst_67 : f32 to vector<2x32xf32>
    %159 = arith.addf %157, %158 : vector<2x32xf32>
    %160 = vector.extract_strided_slice %149 {offsets = [0, 64], sizes = [2, 32], strides = [1, 1]} : vector<2x128xf32> to vector<2x32xf32>
    %161 = vector.extract_strided_slice %149 {offsets = [0, 96], sizes = [2, 32], strides = [1, 1]} : vector<2x128xf32> to vector<2x32xf32>
    %cst_68 = arith.constant 5.000000e-01 : f32
    %162 = vector.broadcast %cst_68 : f32 to vector<2x32xf32>
    %163 = arith.mulf %162, %161 : vector<2x32xf32>
    %cst_69 = arith.constant 5.000000e-01 : f32
    %164 = vector.broadcast %cst_69 : f32 to vector<2x32xf32>
    %165 = arith.addf %163, %164 : vector<2x32xf32>
    %166 = arith.mulf %159, %136 : vector<2x32xf32>
    %167 = arith.mulf %154, %160 : vector<2x32xf32>
    %168 = arith.addf %166, %167 : vector<2x32xf32>
    %169 = math.tanh %168 : vector<2x32xf32>
    %170 = arith.mulf %165, %169 : vector<2x32xf32>
    %171 = arith.index_cast %c4_i32 : i32 to index
    %c0_70 = arith.constant 0 : index
    %c0_71 = arith.constant 0 : index
    %172 = vector.load %arg6[%171, %c0_70, %c0_71] : memref<8x2x32xf32, #tpu.memory_space<vmem>>, vector<1x2x32xf32>
    %173 = vector.shape_cast %172 : vector<1x2x32xf32> to vector<2x32xf32>
    %174 = vector.shape_cast %170 : vector<2x32xf32> to vector<1x2x32xf32>
    tpu.vector_store %arg6[%171, %c0_70, %c0_71], %174 {strides = array<i32>} : memref<8x2x32xf32, #tpu.memory_space<vmem>>, vector<1x2x32xf32>,
    %c5_i32 = arith.constant 5 : i32
    %175 = arith.index_cast %c5_i32 : i32 to index
    %c0_72 = arith.constant 0 : index
    %c0_73 = arith.constant 0 : index
    %176 = vector.load %arg8[%175, %c0_72, %c0_73] : memref<8x2x128xf32, #tpu.memory_space<vmem>>, vector<1x2x128xf32>
    %177 = vector.shape_cast %176 : vector<1x2x128xf32> to vector<2x128xf32>
    %178 = arith.truncf %170 : vector<2x32xf32> to vector<2x32xbf16>
    %cst_74 = arith.constant dense<0.000000e+00> : vector<2x128xf32>
    %179 = tpu.matmul %178, %12, %cst_74 {dimension_numbers = #tpu.dot_dimension_numbers<[1], [0], [0], [1], [0, 0, 1, 1], [], []>} : vector<2x32xbf16>, vector<32x128xbf16>, vector<2x128xf32> -> vector<2x128xf32>
    %180 = arith.addf %177, %179 : vector<2x128xf32>
    %181 = math.tanh %180 : vector<2x128xf32>
    %182 = vector.extract_strided_slice %181 {offsets = [0, 0], sizes = [2, 32], strides = [1, 1]} : vector<2x128xf32> to vector<2x32xf32>
    %cst_75 = arith.constant 5.000000e-01 : f32
    %183 = vector.broadcast %cst_75 : f32 to vector<2x32xf32>
    %184 = arith.mulf %183, %182 : vector<2x32xf32>
    %cst_76 = arith.constant 5.000000e-01 : f32
    %185 = vector.broadcast %cst_76 : f32 to vector<2x32xf32>
    %186 = arith.addf %184, %185 : vector<2x32xf32>
    %187 = vector.extract_strided_slice %181 {offsets = [0, 32], sizes = [2, 32], strides = [1, 1]} : vector<2x128xf32> to vector<2x32xf32>
    %cst_77 = arith.constant 5.000000e-01 : f32
    %188 = vector.broadcast %cst_77 : f32 to vector<2x32xf32>
    %189 = arith.mulf %188, %187 : vector<2x32xf32>
    %cst_78 = arith.constant 5.000000e-01 : f32
    %190 = vector.broadcast %cst_78 : f32 to vector<2x32xf32>
    %191 = arith.addf %189, %190 : vector<2x32xf32>
    %192 = vector.extract_strided_slice %181 {offsets = [0, 64], sizes = [2, 32], strides = [1, 1]} : vector<2x128xf32> to vector<2x32xf32>
    %193 = vector.extract_strided_slice %181 {offsets = [0, 96], sizes = [2, 32], strides = [1, 1]} : vector<2x128xf32> to vector<2x32xf32>
    %cst_79 = arith.constant 5.000000e-01 : f32
    %194 = vector.broadcast %cst_79 : f32 to vector<2x32xf32>
    %195 = arith.mulf %194, %193 : vector<2x32xf32>
    %cst_80 = arith.constant 5.000000e-01 : f32
    %196 = vector.broadcast %cst_80 : f32 to vector<2x32xf32>
    %197 = arith.addf %195, %196 : vector<2x32xf32>
    %198 = arith.mulf %191, %168 : vector<2x32xf32>
    %199 = arith.mulf %186, %192 : vector<2x32xf32>
    %200 = arith.addf %198, %199 : vector<2x32xf32>
    %201 = math.tanh %200 : vector<2x32xf32>
    %202 = arith.mulf %197, %201 : vector<2x32xf32>
    %203 = arith.index_cast %c5_i32 : i32 to index
    %c0_81 = arith.constant 0 : index
    %c0_82 = arith.constant 0 : index
    %204 = vector.load %arg6[%203, %c0_81, %c0_82] : memref<8x2x32xf32, #tpu.memory_space<vmem>>, vector<1x2x32xf32>
    %205 = vector.shape_cast %204 : vector<1x2x32xf32> to vector<2x32xf32>
    %206 = vector.shape_cast %202 : vector<2x32xf32> to vector<1x2x32xf32>
    tpu.vector_store %arg6[%203, %c0_81, %c0_82], %206 {strides = array<i32>} : memref<8x2x32xf32, #tpu.memory_space<vmem>>, vector<1x2x32xf32>,
    %c6_i32 = arith.constant 6 : i32
    %207 = arith.index_cast %c6_i32 : i32 to index
    %c0_83 = arith.constant 0 : index
    %c0_84 = arith.constant 0 : index
    %208 = vector.load %arg8[%207, %c0_83, %c0_84] : memref<8x2x128xf32, #tpu.memory_space<vmem>>, vector<1x2x128xf32>
    %209 = vector.shape_cast %208 : vector<1x2x128xf32> to vector<2x128xf32>
    %210 = arith.truncf %202 : vector<2x32xf32> to vector<2x32xbf16>
    %cst_85 = arith.constant dense<0.000000e+00> : vector<2x128xf32>
    %211 = tpu.matmul %210, %12, %cst_85 {dimension_numbers = #tpu.dot_dimension_numbers<[1], [0], [0], [1], [0, 0, 1, 1], [], []>} : vector<2x32xbf16>, vector<32x128xbf16>, vector<2x128xf32> -> vector<2x128xf32>
    %212 = arith.addf %209, %211 : vector<2x128xf32>
    %213 = math.tanh %212 : vector<2x128xf32>
    %214 = vector.extract_strided_slice %213 {offsets = [0, 0], sizes = [2, 32], strides = [1, 1]} : vector<2x128xf32> to vector<2x32xf32>
    %cst_86 = arith.constant 5.000000e-01 : f32
    %215 = vector.broadcast %cst_86 : f32 to vector<2x32xf32>
    %216 = arith.mulf %215, %214 : vector<2x32xf32>
    %cst_87 = arith.constant 5.000000e-01 : f32
    %217 = vector.broadcast %cst_87 : f32 to vector<2x32xf32>
    %218 = arith.addf %216, %217 : vector<2x32xf32>
    %219 = vector.extract_strided_slice %213 {offsets = [0, 32], sizes = [2, 32], strides = [1, 1]} : vector<2x128xf32> to vector<2x32xf32>
    %cst_88 = arith.constant 5.000000e-01 : f32
    %220 = vector.broadcast %cst_88 : f32 to vector<2x32xf32>
    %221 = arith.mulf %220, %219 : vector<2x32xf32>
    %cst_89 = arith.constant 5.000000e-01 : f32
    %222 = vector.broadcast %cst_89 : f32 to vector<2x32xf32>
    %223 = arith.addf %221, %222 : vector<2x32xf32>
    %224 = vector.extract_strided_slice %213 {offsets = [0, 64], sizes = [2, 32], strides = [1, 1]} : vector<2x128xf32> to vector<2x32xf32>
    %225 = vector.extract_strided_slice %213 {offsets = [0, 96], sizes = [2, 32], strides = [1, 1]} : vector<2x128xf32> to vector<2x32xf32>
    %cst_90 = arith.constant 5.000000e-01 : f32
    %226 = vector.broadcast %cst_90 : f32 to vector<2x32xf32>
    %227 = arith.mulf %226, %225 : vector<2x32xf32>
    %cst_91 = arith.constant 5.000000e-01 : f32
    %228 = vector.broadcast %cst_91 : f32 to vector<2x32xf32>
    %229 = arith.addf %227, %228 : vector<2x32xf32>
    %230 = arith.mulf %223, %200 : vector<2x32xf32>
    %231 = arith.mulf %218, %224 : vector<2x32xf32>
    %232 = arith.addf %230, %231 : vector<2x32xf32>
    %233 = math.tanh %232 : vector<2x32xf32>
    %234 = arith.mulf %229, %233 : vector<2x32xf32>
    %235 = arith.index_cast %c6_i32 : i32 to index
    %c0_92 = arith.constant 0 : index
    %c0_93 = arith.constant 0 : index
    %236 = vector.load %arg6[%235, %c0_92, %c0_93] : memref<8x2x32xf32, #tpu.memory_space<vmem>>, vector<1x2x32xf32>
    %237 = vector.shape_cast %236 : vector<1x2x32xf32> to vector<2x32xf32>
    %238 = vector.shape_cast %234 : vector<2x32xf32> to vector<1x2x32xf32>
    tpu.vector_store %arg6[%235, %c0_92, %c0_93], %238 {strides = array<i32>} : memref<8x2x32xf32, #tpu.memory_space<vmem>>, vector<1x2x32xf32>,
    %c7_i32 = arith.constant 7 : i32
    %239 = arith.index_cast %c7_i32 : i32 to index
    %c0_94 = arith.constant 0 : index
    %c0_95 = arith.constant 0 : index
    %240 = vector.load %arg8[%239, %c0_94, %c0_95] : memref<8x2x128xf32, #tpu.memory_space<vmem>>, vector<1x2x128xf32>
    %241 = vector.shape_cast %240 : vector<1x2x128xf32> to vector<2x128xf32>
    %242 = arith.truncf %234 : vector<2x32xf32> to vector<2x32xbf16>
    %cst_96 = arith.constant dense<0.000000e+00> : vector<2x128xf32>
    %243 = tpu.matmul %242, %12, %cst_96 {dimension_numbers = #tpu.dot_dimension_numbers<[1], [0], [0], [1], [0, 0, 1, 1], [], []>} : vector<2x32xbf16>, vector<32x128xbf16>, vector<2x128xf32> -> vector<2x128xf32>
    %244 = arith.addf %241, %243 : vector<2x128xf32>
    %245 = math.tanh %244 : vector<2x128xf32>
    %246 = vector.extract_strided_slice %245 {offsets = [0, 0], sizes = [2, 32], strides = [1, 1]} : vector<2x128xf32> to vector<2x32xf32>
    %cst_97 = arith.constant 5.000000e-01 : f32
    %247 = vector.broadcast %cst_97 : f32 to vector<2x32xf32>
    %248 = arith.mulf %247, %246 : vector<2x32xf32>
    %cst_98 = arith.constant 5.000000e-01 : f32
    %249 = vector.broadcast %cst_98 : f32 to vector<2x32xf32>
    %250 = arith.addf %248, %249 : vector<2x32xf32>
    %251 = vector.extract_strided_slice %245 {offsets = [0, 32], sizes = [2, 32], strides = [1, 1]} : vector<2x128xf32> to vector<2x32xf32>
    %cst_99 = arith.constant 5.000000e-01 : f32
    %252 = vector.broadcast %cst_99 : f32 to vector<2x32xf32>
    %253 = arith.mulf %252, %251 : vector<2x32xf32>
    %cst_100 = arith.constant 5.000000e-01 : f32
    %254 = vector.broadcast %cst_100 : f32 to vector<2x32xf32>
    %255 = arith.addf %253, %254 : vector<2x32xf32>
    %256 = vector.extract_strided_slice %245 {offsets = [0, 64], sizes = [2, 32], strides = [1, 1]} : vector<2x128xf32> to vector<2x32xf32>
    %257 = vector.extract_strided_slice %245 {offsets = [0, 96], sizes = [2, 32], strides = [1, 1]} : vector<2x128xf32> to vector<2x32xf32>
    %cst_101 = arith.constant 5.000000e-01 : f32
    %258 = vector.broadcast %cst_101 : f32 to vector<2x32xf32>
    %259 = arith.mulf %258, %257 : vector<2x32xf32>
    %cst_102 = arith.constant 5.000000e-01 : f32
    %260 = vector.broadcast %cst_102 : f32 to vector<2x32xf32>
    %261 = arith.addf %259, %260 : vector<2x32xf32>
    %262 = arith.mulf %255, %232 : vector<2x32xf32>
    %263 = arith.mulf %250, %256 : vector<2x32xf32>
    %264 = arith.addf %262, %263 : vector<2x32xf32>
    %265 = math.tanh %264 : vector<2x32xf32>
    %266 = arith.mulf %261, %265 : vector<2x32xf32>
    %267 = arith.index_cast %c7_i32 : i32 to index
    %c0_103 = arith.constant 0 : index
    %c0_104 = arith.constant 0 : index
    %268 = vector.load %arg6[%267, %c0_103, %c0_104] : memref<8x2x32xf32, #tpu.memory_space<vmem>>, vector<1x2x32xf32>
    %269 = vector.shape_cast %268 : vector<1x2x32xf32> to vector<2x32xf32>
    %270 = vector.shape_cast %266 : vector<2x32xf32> to vector<1x2x32xf32>
    tpu.vector_store %arg6[%267, %c0_103, %c0_104], %270 {strides = array<i32>} : memref<8x2x32xf32, #tpu.memory_space<vmem>>, vector<1x2x32xf32>,
    %c8_i32 = arith.constant 8 : i32
    %c0_105 = arith.constant 0 : index
    %c0_106 = arith.constant 0 : index
    %271 = vector.load %arg9[%c0_105, %c0_106] : memref<2x32xf32, #tpu.memory_space<vmem>>, vector<2x32xf32>
    tpu.vector_store %arg9[%c0_105, %c0_106], %266 {strides = array<i32>} : memref<2x32xf32, #tpu.memory_space<vmem>>, vector<2x32xf32>,
    %c0_107 = arith.constant 0 : index
    %c0_108 = arith.constant 0 : index
    %272 = vector.load %arg10[%c0_107, %c0_108] : memref<2x32xf32, #tpu.memory_space<vmem>>, vector<2x32xf32>
    tpu.vector_store %arg10[%c0_107, %c0_108], %264 {strides = array<i32>} : memref<2x32xf32, #tpu.memory_space<vmem>>, vector<2x32xf32>,
    %c1_i32_109 = arith.constant 1 : i32
    %273 = arith.cmpi eq, %arg1, %c1_i32_109 : i32
    %274 = arith.extui %273 : i1 to i32
    %c0_i32_110 = arith.constant 0 : i32
    %275 = arith.cmpi ne, %274, %c0_i32_110 : i32
    scf.if %275 {
      %c0_111 = arith.constant 0 : index
      %c0_112 = arith.constant 0 : index
      %c0_113 = arith.constant 0 : index
      %276 = vector.load %arg7[%c0_111, %c0_112, %c0_113] : memref<1x2x32xf32, #tpu.memory_space<vmem>>, vector<1x2x32xf32>
      %277 = vector.shape_cast %276 : vector<1x2x32xf32> to vector<2x32xf32>
      %278 = vector.shape_cast %264 : vector<2x32xf32> to vector<1x2x32xf32>
      tpu.vector_store %arg7[%c0_111, %c0_112, %c0_113], %278 {strides = array<i32>} : memref<1x2x32xf32, #tpu.memory_space<vmem>>, vector<1x2x32xf32>,
    } else {
    }
    return
  }
  func.func @transform_0(%arg0: i32, %arg1: i32) -> (i32, i32, i32) {
    %c0_i32 = arith.constant 0 : i32
    %c0_i32_0 = arith.constant 0 : i32
    return %arg1, %arg0, %c0_i32 : i32, i32, i32
  }
  func.func @transform_1(%arg0: i32, %arg1: i32) -> (i32, i32) {
    %c0_i32 = arith.constant 0 : i32
    %c0_i32_0 = arith.constant 0 : i32
    %c0_i32_1 = arith.constant 0 : i32
    return %c0_i32, %c0_i32_0 : i32, i32
  }
  func.func @transform_2(%arg0: i32, %arg1: i32) -> (i32, i32) {
    %c0_i32 = arith.constant 0 : i32
    %c0_i32_0 = arith.constant 0 : i32
    %c0_i32_1 = arith.constant 0 : i32
    return %c0_i32, %c0_i32_0 : i32, i32
  }
  func.func @transform_3(%arg0: i32, %arg1: i32) -> (i32, i32) {
    %c0_i32 = arith.constant 0 : i32
    %c0_i32_0 = arith.constant 0 : i32
    %c0_i32_1 = arith.constant 0 : i32
    return %c0_i32, %c0_i32_0 : i32, i32
  }
  func.func @transform_4(%arg0: i32, %arg1: i32) -> (i32, i32, i32) {
    %c0_i32 = arith.constant 0 : i32
    %c0_i32_0 = arith.constant 0 : i32
    return %arg1, %arg0, %c0_i32 : i32, i32, i32
  }
  func.func @transform_5(%arg0: i32, %arg1: i32) -> (i32, i32, i32) {
    %c0_i32 = arith.constant 0 : i32
    %c0_i32_0 = arith.constant 0 : i32
    %c0_i32_1 = arith.constant 0 : i32
    return %arg0, %c0_i32, %c0_i32_0 : i32, i32, i32
  }
}

</mosaic_0001>

<bundles_post_ra>
// kernel: light_encoder_forward.1
= control target key start
LH: loop header
LB: loop body
LE: loop exit
PB: predicated region body
PF: predicated region fallthrough
CT: control target
= control target key end

     0   :  { %11 = vsyncpa [#allocation6], 0  ;;  %s1094_s18 = smov 0   ;;  %s1096_s19 = smov 0   ;;  %s1263_s0 = inlined_call_operand.vmem [shape: bf16[16,2,32], index: 0, kind: input, shape index: {}]   ;;  %s1264_s1 = inlined_call_operand.vmem [shape: bf16[32,128], index: 1, kind: input, shape index: {}]   ;;  %s1265_s2 = inlined_call_operand.vmem [shape: bf16[32,128], index: 2, kind: input, shape index: {}]   ;;  %s1266_s3 = inlined_call_operand.vmem [shape: f32[1,128], index: 3, kind: input, shape index: {}]   ;;  %s1267_s4 = inlined_call_operand.vmem [shape: f32[16,2,32], index: 4, kind: output, shape index: {0}]   ;;  %s1268_s5 = inlined_call_operand.hbm [shape: f32[1,2,32], index: 5, kind: output, shape index: {1}]  }
   0x1   :  { %s1098_s20 = smov 0  }
   0x2 LB: > { %s885_s21 = sadd.s32 4294967295, %s1057_s20   ;;  %s26_s22 = sadd.s32 1, %s1053_s19  ;;  %s1057_s20 = sphi %s1098_s20, %s17_s20   ;;  %s1053_s19 = sphi %s1096_s19, %s1270_s19   ;;  %s1049_s18 = sphi %s1094_s18, %s1269_s18  }
   0x3   : > { %p27_p0 = scmp.ge.s32.totalorder %s26_s22, 2  ;;  %p889_p1 = scmp.ge.s32.totalorder %s1057_s20, 1 }
   0x4   : > { %p210_p2 = scmp.lt.s32.totalorder %s1057_s20, 3 }
   0x5   : > { %s1272_s22 = smov (%p27_p0, %s26_s22), 0 }
   0x6   : > { %p211_p3 = pnand %p889_p1, %p210_p2 }
   0x7   : > { %s890_s23 = sshll.u32 (!%p211_p3), %s1049_s18, 3  ;;  %p893_p5 = scmp.ne.s32.totalorder (!%p211_p3), %s1049_s18, 0 }
   0x8   : > { %214 = sbr.rel (%p211_p3) target bundleno = 4719 (0x126f), region = 36  ;;  %p244_p4 = scmp.lt.s32.totalorder (!%p211_p3), %s890_s23, 15 }
   0xd   : > { %s1274_s23 = smov (!%p244_p4, %s890_s23), 15  ;;  %264 = sbr.rel (%p893_p5) target bundleno = 21 (0x15), region = 40 }
   0xe   : > { %s1119_s26 = scalar_lea.vmem %s1263_s0, %s1274_s23  ;;  %s892_s27 = sshll.u32 %s1274_s23, 1 }
   0xf   : > { %s1124_s30 = scalar_lea.vmem %s1267_s4, %s892_s27 }
  0x12   : > { %vm265_vm0 = vcmask 254976   ;;  %v1059_v0 = vmov 0.0  }
  0x13   : > { %266 = vst.msk [vmem:[#allocation3] sm:$0x3] %vm265_vm0, %v1059_v0 }
  0x14   : > { %267 = vst.msk [vmem:[#allocation4] sm:$0x3] %vm265_vm0, %v1059_v0 }
  0x15 PF: > { %v932_v1 = vld [vmem:[%s1264_s1 + $0x8] sm:$0xff]  ;;  %v268_v3 = vld [vmem:[%s1119_s26] sm:$0x1]  ;;  %v269_v6 = vld [vmem:[%s1119_s26 + $0x1] sm:$0x1]  ;;  %vm320_vm1 = vcmask 261120  }
  0x16   : > { %v934_v2 = vld [vmem:[%s1265_s2 + $0x8] sm:$0xff]  ;;  %329 = vmatpush.bf16.msra.mxu0 %v932_v1  ;;  %v931_v4 = vld [vmem:[%s1264_s1] sm:$0xff]  ;;  %285 = vst [vmem:[#allocation1] ss:$9 sm:$0xff] %v268_v3  ;;  %s1060_s16 = smov 64   ;;  %s1061_s17 = smov 32  }
  0x17   : > { %388 = vmatpush.bf16.msra.mxu1 %v934_v2  ;;  %v933_v5 = vld [vmem:[%s1265_s2] sm:$0xff]  ;;  %441 = vmatpush.bf16.msra.mxu2 %v934_v2  ;;  %288 = vst [vmem:[#allocation1 + $0x1] ss:$9 sm:$0xff] %v269_v6  ;;  %vm424_vm2 = vcmask 254976   ;;  %s1062_s23 = smov 96   ;;  %p926_p6 = scmp.ne.s32.totalorder %s1049_s18, 1 }
  0x18   : > { %v270_v7 = vld [vmem:[%s1119_s26 + $0x2] sm:$0x1]  ;;  %v271_v8 = vld [vmem:[%s1119_s26 + $0x3] sm:$0x1]  ;;  %490 = vmatpush.bf16.msra.mxu3 %v934_v2  ;;  %v272_v10 = vld [vmem:[%s1119_s26 + $0x4] sm:$0x1] }
  0x19   : > { %v273_v12 = vld [vmem:[%s1119_s26 + $0x5] sm:$0x1]  ;;  %291 = vst [vmem:[#allocation1 + $0x2] ss:$9 sm:$0xff] %v270_v7  ;;  %v274_v13 = vld [vmem:[%s1119_s26 + $0x6] sm:$0x1] }
  0x1a   : > { %v363_v9 = vld [vmem:[#allocation3] sm:$0x3]  ;;  %330 = vmatpush.bf16.msra.mxu0 %v931_v4  ;;  %294 = vst [vmem:[#allocation1 + $0x3] ss:$9 sm:$0xff] %v271_v8  ;;  %v275_v14 = vld [vmem:[%s1119_s26 + $0x7] sm:$0x1] }
  0x1b   : > { %v366_v11 = vpack.c.bf16 %v363_v9, %v363_v9  ;;  %389 = vmatpush.bf16.msra.mxu1 %v933_v5  ;;  %442 = vmatpush.bf16.msra.mxu2 %v933_v5  ;;  %297 = vst [vmem:[#allocation1 + $0x4] ss:$9 sm:$0xff] %v272_v10  ;;  %v970_v17 = vld [vmem:[%s1266_s3] ss:$0 sm:$0xff]  ;;  %v364_v32 = vld [vmem:[#allocation4] sm:$0x3] }
  0x1c   : > { %491 = vmatpush.bf16.msra.mxu3 %v933_v5  ;;  %300 = vst [vmem:[#allocation1 + $0x5] ss:$9 sm:$0xff] %v273_v12 }
  0x1d   : > { %303 = vst [vmem:[#allocation1 + $0x6] ss:$9 sm:$0xff] %v274_v13 }
  0x1e   : > { %539 = vmatpush.bf16.msrb.mxu0 %v934_v2  ;;  %911 = vmatmul.msk.bf16.vlgmr.msra.gmra.mxu1 %vm320_vm1, %v366_v11  ;;  %306 = vst [vmem:[#allocation1 + $0x7] ss:$9 sm:$0xff] %v275_v14 }
  0x1f   : > { %588 = vmatpush.bf16.msrb.mxu1 %v934_v2  ;;  %637 = vmatpush.bf16.msrb.mxu2 %v934_v2 }
  0x20   : > { %686 = vmatpush.bf16.msrb.mxu3 %v934_v2 }
  0x22   : > { %540 = vmatpush.bf16.msrb.mxu0 %v933_v5 }
  0x23   : > { %589 = vmatpush.bf16.msrb.mxu1 %v933_v5  ;;  %638 = vmatpush.bf16.msrb.mxu2 %v933_v5 }
  0x24   : > { %687 = vmatpush.bf16.msrb.mxu3 %v933_v5 }
  0x25   : > { %v307_v15 = vld [vmem:[#allocation1] sm:$0xff] }
  0x26   : > { %902 = vmatmul.msk.bf16.vlgmr.msra.gmra.mxu0 %vm320_vm1, %v307_v15 }
  0x27   : > { %735 = vmatpush.bf16.msra.mxu0 %v934_v2 }
  0x2b   : > { %736 = vmatpush.bf16.msra.mxu0 %v933_v5 }
  0x9b   : > { %v391_v16 = vpop.f32.mrf.mxu1 }
  0xa3   : > { %v393_v18 = vpop.f32.mrf.mxu1  ;;  %v332_v19 = vpop.f32.mrf.mxu0 }
  0xa4   : > { %v333_v20 = vadd.f32 %v970_v17, %v332_v19 }
  0xa6   : > { %v339_v21 = vrot.slane %v333_v20, 2  ;;  %v340_v22 = vrot.slane %v333_v20, 4  ;;  %v341_v23 = vrot.slane %v333_v20, 6  ;;  %351 = vst [vmem:[#allocation2] sm:$0x3] %v333_v20 }
  0xa8   : > { %352 = vst [vmem:[#allocation2 + $0x2] sm:$0x3] %v339_v21 }
  0xa9   : > { %353 = vst [vmem:[#allocation2 + $0x4] sm:$0x3] %v340_v22 }
  0xaa   : > { %354 = vst [vmem:[#allocation2 + $0x6] sm:$0x3] %v341_v23 }
  0xab   : > { %v334_v24 = vpop.f32.mrf.mxu0 }
  0xac   : > { %v335_v25 = vadd.f32 %v970_v17, %v334_v24 }
  0xad   : > { %v365_v26 = vld [vmem:[#allocation2] sm:$0x3] }
  0xae   : > { %v395_v27 = vadd.f32 %v391_v16, %v365_v26  ;;  %v342_v28 = vrot.slane %v335_v25, 2  ;;  %v343_v29 = vrot.slane %v335_v25, 4  ;;  %v344_v30 = vrot.slane %v335_v25, 6  ;;  %355 = vst [vmem:[#allocation2 + $0x8] sm:$0x3] %v335_v25 }
  0xaf   : > { %v427_v46 = vld [vmem:[#allocation2 + $0x2] sm:$0x3] }
  0xb0   : > { %971 = vtanh.f32 %v395_v27  ;;  %356 = vst [vmem:[#allocation2 + $0xa] sm:$0x3] %v342_v28  ;;  %v476_v63 = vld [vmem:[#allocation2 + $0x4] sm:$0x3] }
  0xb1   : > { %357 = vst [vmem:[#allocation2 + $0xc] sm:$0x3] %v343_v29  ;;  %v525_v16 = vld [vmem:[#allocation2 + $0x6] sm:$0x3] }
  0xb2   : > { %358 = vst [vmem:[#allocation2 + $0xe] sm:$0x3] %v344_v30 }
  0xb6   : > { %v972_v31 = vpop.eup %971 }
  0xb7   : > { %405 = vrot.lane.b32.xlu0 %v972_v31, %s1060_s16  ;;  %v397_v33 = vmul.f32 0.5, %v972_v31 }
  0xb9   : > { %v398_v34 = vadd.f32 0.5, %v397_v33  ;;  %v574_v33 = vld [vmem:[#allocation2 + $0x8] sm:$0x3] }
  0xbf   : > { %400 = vrot.lane.b32.xlu0 %v364_v32, %s1061_s17 }
 0x129   : > { %v406_v35 = vpop.permute.xlu0 %405 }
 0x12a   : > { %v408_v36 = vmul.f32 %v406_v35, %v398_v34 }
 0x12c   : > { %410 = vrot.lane.b32.xlu1 %v408_v36, %s1061_s17 }
 0x131   : > { %v401_v37 = vpop.permute.xlu0 %400 }
 0x132   : > { %v403_v38 = vmul.f32 %v401_v37, %v398_v34 }
 0x19e   : > { %v411_v39 = vpop.permute.xlu1 %410 }
 0x19f   : > { %v413_v40 = vadd.f32 %v411_v39, %v403_v38 }
 0x1a1   : > { %973 = vtanh.f32 %v413_v40 }
 0x1a7   : > { %v974_v41 = vpop.eup %973 }
 0x1a8   : > { %416 = vrot.lane.b32.xlu1 %v974_v41, %s1060_s16 }
 0x21a   : > { %v417_v42 = vpop.permute.xlu1 %416 }
 0x21b   : > { %v1156_v43 = vmul.f32 %v417_v42, %v398_v34 }
 0x21d   : > { %v428_v44 = vpack.c.bf16 %v1156_v43, %v1156_v43 }
 0x21f   : > { %430 = vrot.lane.b32.xlu2 %v428_v44, %s1061_s17 }
 0x279   : > { %v431_v45 = vpop.permute.xlu2 %430 }
 0x27a   : > { %912 = vmatmul.msk.bf16.vlgmr.msra.gmra.mxu2 %vm320_vm1, %v431_v45 }
 0x2fd   : > { %v444_v47 = vpop.f32.mrf.mxu2 }
 0x2fe   : > { %v448_v48 = vadd.f32 %v444_v47, %v427_v46 }
 0x300   : > { %975 = vtanh.f32 %v448_v48 }
 0x305   : > { %v446_v49 = vpop.f32.mrf.mxu2 }
 0x306   : > { %v976_v50 = vpop.eup %975 }
 0x307   : > { %454 = vrot.lane.b32.xlu2 %v976_v50, %s1060_s16  ;;  %v450_v51 = vmul.f32 0.5, %v976_v50 }
 0x309   : > { %v451_v52 = vadd.f32 0.5, %v450_v51  ;;  %v623_v51 = vld [vmem:[#allocation2 + $0xa] sm:$0x3] }
 0x30b   : > { %v452_v55 = vmul.f32 %v451_v52, %v413_v40 }
 0x361   : > { %v455_v53 = vpop.permute.xlu2 %454 }
 0x362   : > { %v457_v54 = vmul.f32 %v455_v53, %v451_v52 }
 0x364   : > { %459 = vrot.lane.b32.xlu0 %v457_v54, %s1061_s17 }
 0x3d6   : > { %v460_v56 = vpop.permute.xlu0 %459 }
 0x3d7   : > { %v462_v57 = vadd.f32 %v460_v56, %v452_v55 }
 0x3d9   : > { %977 = vtanh.f32 %v462_v57 }
 0x3df   : > { %v978_v58 = vpop.eup %977 }
 0x3e0   : > { %465 = vrot.lane.b32.xlu1 %v978_v58, %s1060_s16 }
 0x452   : > { %v466_v59 = vpop.permute.xlu1 %465 }
 0x453   : > { %v1165_v60 = vmul.f32 %v466_v59, %v451_v52 }
 0x455   : > { %v477_v61 = vpack.c.bf16 %v1165_v60, %v1165_v60 }
 0x457   : > { %479 = vrot.lane.b32.xlu2 %v477_v61, %s1061_s17 }
 0x4b1   : > { %v480_v62 = vpop.permute.xlu2 %479 }
 0x4b2   : > { %914 = vmatmul.msk.bf16.vlgmr.msra.gmra.mxu3 %vm320_vm1, %v480_v62 }
 0x535   : > { %v493_v0 = vpop.f32.mrf.mxu3 }
 0x536   : > { %v497_v1 = vadd.f32 %v493_v0, %v476_v63 }
 0x538   : > { %979 = vtanh.f32 %v497_v1 }
 0x53d   : > { %v495_v2 = vpop.f32.mrf.mxu3 }
 0x53e   : > { %v980_v3 = vpop.eup %979 }
 0x53f   : > { %503 = vrot.lane.b32.xlu0 %v980_v3, %s1060_s16  ;;  %v499_v4 = vmul.f32 0.5, %v980_v3 }
 0x541   : > { %v500_v5 = vadd.f32 0.5, %v499_v4 }
 0x543   : > { %v501_v8 = vmul.f32 %v500_v5, %v462_v57 }
 0x5b1   : > { %v504_v6 = vpop.permute.xlu0 %503 }
 0x5b2   : > { %v506_v7 = vmul.f32 %v504_v6, %v500_v5 }
 0x5b4   : > { %508 = vrot.lane.b32.xlu1 %v506_v7, %s1061_s17 }
 0x626   : > { %v509_v9 = vpop.permute.xlu1 %508 }
 0x627   : > { %v511_v10 = vadd.f32 %v509_v9, %v501_v8 }
 0x629   : > { %981 = vtanh.f32 %v511_v10 }
 0x62f   : > { %v982_v11 = vpop.eup %981 }
 0x630   : > { %514 = vrot.lane.b32.xlu2 %v982_v11, %s1060_s16 }
 0x68a   : > { %v515_v12 = vpop.permute.xlu2 %514 }
 0x68b   : > { %v1174_v13 = vmul.f32 %v515_v12, %v500_v5  ;;  %v672_v5 = vld [vmem:[#allocation2 + $0xc] sm:$0x3] }
 0x68d   : > { %v526_v14 = vpack.c.bf16 %v1174_v13, %v1174_v13 }
 0x68f   : > { %528 = vrot.lane.b32.xlu0 %v526_v14, %s1061_s17 }
 0x701   : > { %v529_v15 = vpop.permute.xlu0 %528 }
 0x702   : > { %916 = vmatmul.msk.bf16.vlgmr.msrb.gmra.mxu0 %vm320_vm1, %v529_v15 }
 0x77f   : > { %v542_v17 = vpop.f32.mrf.mxu0 }
 0x780   : > { %v546_v18 = vadd.f32 %v542_v17, %v525_v16 }
 0x782   : > { %983 = vtanh.f32 %v546_v18 }
 0x787   : > { %v544_v19 = vpop.f32.mrf.mxu0 }
 0x788   : > { %v984_v20 = vpop.eup %983 }
 0x789   : > { %552 = vrot.lane.b32.xlu1 %v984_v20, %s1060_s16  ;;  %v548_v21 = vmul.f32 0.5, %v984_v20 }
 0x78b   : > { %v549_v22 = vadd.f32 0.5, %v548_v21 }
 0x78d   : > { %v550_v25 = vmul.f32 %v549_v22, %v511_v10 }
 0x7fb   : > { %v553_v23 = vpop.permute.xlu1 %552 }
 0x7fc   : > { %v555_v24 = vmul.f32 %v553_v23, %v549_v22  ;;  %v721_v23 = vld [vmem:[#allocation2 + $0xe] sm:$0x3] }
 0x7fe   : > { %557 = vrot.lane.b32.xlu2 %v555_v24, %s1061_s17 }
 0x858   : > { %v558_v26 = vpop.permute.xlu2 %557 }
 0x859   : > { %v560_v27 = vadd.f32 %v558_v26, %v550_v25 }
 0x85b   : > { %985 = vtanh.f32 %v560_v27 }
 0x861   : > { %v986_v28 = vpop.eup %985 }
 0x862   : > { %563 = vrot.lane.b32.xlu0 %v986_v28, %s1060_s16 }
 0x8d4   : > { %v564_v29 = vpop.permute.xlu0 %563 }
 0x8d5   : > { %v1183_v30 = vmul.f32 %v564_v29, %v549_v22 }
 0x8d7   : > { %v575_v31 = vpack.c.bf16 %v1183_v30, %v1183_v30 }
 0x8d9   : > { %577 = vrot.lane.b32.xlu1 %v575_v31, %s1061_s17 }
 0x94b   : > { %v578_v32 = vpop.permute.xlu1 %577 }
 0x94c   : > { %918 = vmatmul.msk.bf16.vlgmr.msrb.gmra.mxu1 %vm320_vm1, %v578_v32 }
 0x9c9   : > { %v591_v34 = vpop.f32.mrf.mxu1 }
 0x9ca   : > { %v595_v35 = vadd.f32 %v591_v34, %v574_v33 }
 0x9cc   : > { %987 = vtanh.f32 %v595_v35 }
 0x9d1   : > { %v593_v36 = vpop.f32.mrf.mxu1 }
 0x9d2   : > { %v988_v37 = vpop.eup %987 }
 0x9d3   : > { %601 = vrot.lane.b32.xlu2 %v988_v37, %s1060_s16  ;;  %v597_v38 = vmul.f32 0.5, %v988_v37 }
 0x9d5   : > { %v598_v39 = vadd.f32 0.5, %v597_v38 }
 0x9d7   : > { %v599_v42 = vmul.f32 %v598_v39, %v560_v27 }
 0xa2d   : > { %v602_v40 = vpop.permute.xlu2 %601 }
 0xa2e   : > { %v604_v41 = vmul.f32 %v602_v40, %v598_v39 }
 0xa30   : > { %606 = vrot.lane.b32.xlu0 %v604_v41, %s1061_s17 }
 0xaa2   : > { %v607_v44 = vpop.permute.xlu0 %606 }
 0xaa3   : > { %v609_v45 = vadd.f32 %v607_v44, %v599_v42 }
 0xaa5   : > { %989 = vtanh.f32 %v609_v45 }
 0xaab   : > { %v990_v46 = vpop.eup %989 }
 0xaac   : > { %612 = vrot.lane.b32.xlu1 %v990_v46, %s1060_s16 }
 0xb1e   : > { %v613_v47 = vpop.permute.xlu1 %612 }
 0xb1f   : > { %v1192_v48 = vmul.f32 %v613_v47, %v598_v39 }
 0xb21   : > { %v624_v49 = vpack.c.bf16 %v1192_v48, %v1192_v48 }
 0xb23   : > { %626 = vrot.lane.b32.xlu2 %v624_v49, %s1061_s17 }
 0xb7d   : > { %v627_v50 = vpop.permute.xlu2 %626 }
 0xb7e   : > { %920 = vmatmul.msk.bf16.vlgmr.msrb.gmra.mxu2 %vm320_vm1, %v627_v50 }
 0xc01   : > { %v640_v52 = vpop.f32.mrf.mxu2 }
 0xc02   : > { %v644_v53 = vadd.f32 %v640_v52, %v623_v51 }
 0xc04   : > { %991 = vtanh.f32 %v644_v53 }
 0xc09   : > { %v642_v54 = vpop.f32.mrf.mxu2 }
 0xc0a   : > { %v992_v55 = vpop.eup %991 }
 0xc0b   : > { %650 = vrot.lane.b32.xlu0 %v992_v55, %s1060_s16  ;;  %v646_v56 = vmul.f32 0.5, %v992_v55 }
 0xc0d   : > { %v647_v57 = vadd.f32 0.5, %v646_v56 }
 0xc0f   : > { %v648_v61 = vmul.f32 %v647_v57, %v609_v45 }
 0xc7d   : > { %v651_v58 = vpop.permute.xlu0 %650 }
 0xc7e   : > { %v653_v59 = vmul.f32 %v651_v58, %v647_v57 }
 0xc80   : > { %655 = vrot.lane.b32.xlu1 %v653_v59, %s1061_s17 }
 0xcf2   : > { %v656_v62 = vpop.permute.xlu1 %655 }
 0xcf3   : > { %v658_v63 = vadd.f32 %v656_v62, %v648_v61 }
 0xcf5   : > { %993 = vtanh.f32 %v658_v63 }
 0xcfb   : > { %v994_v0 = vpop.eup %993 }
 0xcfc   : > { %661 = vrot.lane.b32.xlu2 %v994_v0, %s1060_s16 }
 0xd56   : > { %v662_v1 = vpop.permute.xlu2 %661 }
 0xd57   : > { %v1201_v2 = vmul.f32 %v662_v1, %v647_v57 }
 0xd59   : > { %v673_v3 = vpack.c.bf16 %v1201_v2, %v1201_v2 }
 0xd5b   : > { %675 = vrot.lane.b32.xlu0 %v673_v3, %s1061_s17 }
 0xdcd   : > { %v676_v4 = vpop.permute.xlu0 %675 }
 0xdce   : > { %922 = vmatmul.msk.bf16.vlgmr.msrb.gmra.mxu3 %vm320_vm1, %v676_v4 }
 0xe51   : > { %v689_v6 = vpop.f32.mrf.mxu3 }
 0xe52   : > { %v693_v7 = vadd.f32 %v689_v6, %v672_v5 }
 0xe54   : > { %995 = vtanh.f32 %v693_v7 }
 0xe59   : > { %v691_v8 = vpop.f32.mrf.mxu3 }
 0xe5a   : > { %v996_v9 = vpop.eup %995 }
 0xe5b   : > { %699 = vrot.lane.b32.xlu1 %v996_v9, %s1060_s16  ;;  %v695_v10 = vmul.f32 0.5, %v996_v9 }
 0xe5d   : > { %v696_v11 = vadd.f32 0.5, %v695_v10 }
 0xe5f   : > { %v697_v15 = vmul.f32 %v696_v11, %v658_v63 }
 0xecd   : > { %v700_v12 = vpop.permute.xlu1 %699 }
 0xece   : > { %v702_v14 = vmul.f32 %v700_v12, %v696_v11 }
 0xed0   : > { %704 = vrot.lane.b32.xlu2 %v702_v14, %s1061_s17 }
 0xf2a   : > { %v705_v16 = vpop.permute.xlu2 %704 }
 0xf2b   : > { %v707_v17 = vadd.f32 %v705_v16, %v697_v15 }
 0xf2d   : > { %997 = vtanh.f32 %v707_v17 }
 0xf33   : > { %v998_v18 = vpop.eup %997 }
 0xf34   : > { %710 = vrot.lane.b32.xlu0 %v998_v18, %s1060_s16 }
 0xfa6   : > { %v711_v19 = vpop.permute.xlu0 %710 }
 0xfa7   : > { %v713_v20 = vmul.f32 %v711_v19, %v696_v11 }
 0xfa9   : > { %v722_v21 = vpack.c.bf16 %v713_v20, %v713_v20 }
 0xfab   : > { %724 = vrot.lane.b32.xlu1 %v722_v21, %s1061_s17 }
0x101d   : > { %v725_v22 = vpop.permute.xlu1 %724 }
0x101e   : > { %924 = vmatmul.msk.bf16.vlgmr.msra.gmra.mxu0 %vm320_vm1, %v725_v22 }
0x109b   : > { %v738_v24 = vpop.f32.mrf.mxu0 }
0x109c   : > { %v742_v25 = vadd.f32 %v738_v24, %v721_v23 }
0x109e   : > { %999 = vtanh.f32 %v742_v25 }
0x10a3   : > { %v740_v26 = vpop.f32.mrf.mxu0 }
0x10a4   : > { %v1000_v27 = vpop.eup %999 }
0x10a5   : > { %748 = vrot.lane.b32.xlu2 %v1000_v27, %s1060_s16  ;;  %v744_v28 = vmul.f32 0.5, %v1000_v27 }
0x10a7   : > { %v745_v29 = vadd.f32 0.5, %v744_v28 }
0x10a9   : > { %v746_v34 = vmul.f32 %v745_v29, %v707_v17 }
0x10ad   : > { %421 = vrot.lane.b32.xlu2 %v1156_v43, %s1061_s17 }
0x10b5   : > { %568 = vrot.lane.b32.xlu2 %v1183_v30, %s1061_s17 }
0x10bd   : > { %715 = vrot.lane.b32.xlu2 %v713_v20, %s1061_s17 }
0x10ff   : > { %v749_v31 = vpop.permute.xlu2 %748 }
0x1100   : > { %v751_v32 = vmul.f32 %v749_v31, %v745_v29 }
0x1102   : > { %753 = vrot.lane.b32.xlu0 %v751_v32, %s1061_s17 }
0x1107   : > { %v422_v33 = vpop.permute.xlu2 %421 }
0x1108   : > { %425 = vst.msk [vmem:[%s1124_s30] sm:$0x3] %vm424_vm2, %v422_v33 }
0x110a   : > { %470 = vrot.lane.b32.xlu0 %v1165_v60, %s1061_s17 }
0x110f   : > { %v569_v43 = vpop.permute.xlu2 %568 }
0x1110   : > { %917 = vst.msk [vmem:[%s1124_s30 + $0x6] sm:$0x3] %vm424_vm2, %v569_v43 }
0x1112   : > { %617 = vrot.lane.b32.xlu0 %v1192_v48, %s1061_s17 }
0x1117   : > { %v716_v30 = vpop.permute.xlu2 %715 }
0x1118   : > { %923 = vst.msk [vmem:[%s1124_s30 + $0xc] sm:$0x3] %vm424_vm2, %v716_v30 }
0x1174   : > { %v754_v35 = vpop.permute.xlu0 %753 }
0x1175   : > { %v756_v36 = vadd.f32 %v754_v35, %v746_v34 }
0x1177   : > { %1001 = vtanh.f32 %v756_v36 }
0x117c   : > { %v471_v37 = vpop.permute.xlu0 %470 }
0x117d   : > { %v1002_v38 = vpop.eup %1001  ;;  %913 = vst.msk [vmem:[%s1124_s30 + $0x2] sm:$0x3] %vm424_vm2, %v471_v37 }
0x117e   : > { %759 = vrot.lane.b32.xlu1 %v1002_v38, %s1060_s16 }
0x1184   : > { %v618_v60 = vpop.permute.xlu0 %617 }
0x1185   : > { %919 = vst.msk [vmem:[%s1124_s30 + $0x8] sm:$0x3] %vm424_vm2, %v618_v60 }
0x1186   : > { %519 = vrot.lane.b32.xlu1 %v1174_v13, %s1061_s17 }
0x118e   : > { %666 = vrot.lane.b32.xlu1 %v1201_v2, %s1061_s17 }
0x1196   : > { %771 = vrot.lane.b32.xlu1 %v756_v36, %s1062_s23 }
0x11f0   : > { %v760_v39 = vpop.permute.xlu1 %759 }
0x11f1   : > { %v762_v40 = vmul.f32 %v760_v39, %v745_v29 }
0x11f3   : > { %764 = vrot.lane.b32.xlu0 %v762_v40, %s1061_s17 }
0x11f8   : > { %v520_v41 = vpop.permute.xlu1 %519 }
0x11f9   : > { %915 = vst.msk [vmem:[%s1124_s30 + $0x4] sm:$0x3] %vm424_vm2, %v520_v41 }
0x1200   : > { %v667_v42 = vpop.permute.xlu1 %666 }
0x1201   : > { %921 = vst.msk [vmem:[%s1124_s30 + $0xa] sm:$0x3] %vm424_vm2, %v667_v42 }
0x1208   : > { %v772_v44 = vpop.permute.xlu1 %771 }
0x1209   : > { %774 = vst.msk [vmem:[#allocation4] sm:$0x3] %vm424_vm2, %v772_v44 }
0x1263   : > { %778 = sbr.rel (%p926_p6) target bundleno = 4713 (0x1269), region = 44 }
0x1265   : > { %v765_v45 = vpop.permute.xlu0 %764 }
0x1266   : > { %925 = vst.msk [vmem:[%s1124_s30 + $0xe] sm:$0x3] %vm424_vm2, %v765_v45 }
0x1267   : > { %769 = vst.msk [vmem:[#allocation3] sm:$0x3] %vm424_vm2, %v765_v45 }
0x1268   : > { %779 = vst.msk [vmem:[#allocation5] sm:$0x3] %vm424_vm2, %v772_v44 }
0x1269 PF: > { %p939_p7 = scmp.eq.s32.totalorder %s885_s21, 1  ;;  %s802_s26 = sshll.u32 %s1268_s5, 4  ;;  %s803_s26 = int_to_ptr.hbm [resolvable:$true] %s802_s26 }
0x126a   : > { %s1063_s27 = smov [#allocation5]  }
0x126b   : > { %s800_s28 = sshll.u32 %s1063_s27, 4  ;;  %s801_s28 = int_to_ptr.vmem [resolvable:$true] %s800_s28 }
0x126c   : > { %936 = dma.vmem_to_hbm [thread:$0]  (%p939_p7), %s801_s28, 32, %s803_s26, [#allocation6]  }
0x126d   : > { %1044 = dma.done.wait (%p939_p7), [#allocation6], 32  }
0x126e   : > { %1046 = vsyncadd (%p939_p7), [#allocation6], 4294967264 }
0x126f PF: > { %s17_s20 = sadd.s32 1, %s1057_s20   ;;  %s1269_s18 = smov %s1053_s19 }
0x1270   : > { %p14_p8 = scmp.ge.s32.totalorder %s17_s20, 4   ;;  %s1270_s19 = smov %s1272_s22 }
0x1272   :  { %16 = sbr.rel (!%p14_p8) target bundleno = 2 (0x2), region = 105 }
0x1277   :  { %827 = vsyncpa [#allocation6], 1 }
0x1278   :  { %829 = vsyncpa [#allocation6 + $0x1], 1 }

</bundles_post_ra>
